<compile_context>
chip_gen: v5e
topology: v5e:2x2
jax: 0.10.0
libtpu: 0.0.40
codegen_flags: <defaults>
</compile_context>

<pallas_src>
import functools

import jax
import jax.numpy as jnp
from jax.experimental import pallas as pl
from jax.experimental.pallas import tpu as pltpu

_LANES = 128
# Per-block byte cap.  Pipeline VMEM ~= 4x block (input double-buffer +
# output double-buffer -- HBM aliasing would NOT remove the output's VMEM
# buffers), so 4 MiB blocks -> ~16 MiB, inside the 32 MiB default scoped VMEM
# on v5e/v6e/v7x and well inside v7x's 64 MiB physical per-TC VMEM.
_MAX_TILE_BYTES = 4 * 1024 * 1024


def _sublane_multiple(dtype):
    """Minimum packed sublane granularity for the dtype."""
    itemsize = jnp.dtype(dtype).itemsize
    if itemsize >= 4:
        return 8      # f32 / i32
    if itemsize == 2:
        return 16     # bf16 / f16
    return 32         # int8 / fp8


def _choose_tile_rows(rows, dtype):
    """VMEM-safe, dtype-aware row tile (always a multiple of the sublane pack)."""
    sub = _sublane_multiple(dtype)
    bytes_per_row = _LANES * jnp.dtype(dtype).itemsize
    cap = max(sub, (_MAX_TILE_BYTES // bytes_per_row) // sub * sub)
    if rows <= cap:
        # Full extent, rounded up to the sublane pack (wrapper pads to match).
        return ((rows + sub - 1) // sub) * sub
    return cap


def _decoder_identity_kernel(x_ref, o_ref):
    # TODO(synk): the base Decoder defines no forward math; a concrete
    # subclass (attention / FFN decoder) replaces this pass-through body and
    # should keep the hidden dim lane-resident with MXU-sized matmul tiles and
    # an f32 VMEM accumulator, rather than inheriting this flattened layout.
    o_ref[...] = x_ref[...]


def _pallas_identity(X):
    """Pallas pass-through template (not used on the default forward path)."""
    dtype = X.dtype
    flat = X.reshape(-1)
    total = flat.shape[0]
    rows = pl.cdiv(total, _LANES)
    tile_rows = _choose_tile_rows(rows, dtype)
    padded_rows = ((rows + tile_rows - 1) // tile_rows) * tile_rows
    pad = padded_rows * _LANES - total
    if pad:
        flat = jnp.pad(flat, (0, pad))
    x2d = flat.reshape(padded_rows, _LANES)   # lane-dense 2D slab
    grid = (padded_rows // tile_rows,)

    out2d = pl.pallas_call(
        _decoder_identity_kernel,
        out_shape=jax.ShapeDtypeStruct((padded_rows, _LANES), dtype),
        grid=grid,
        in_specs=[pl.BlockSpec((tile_rows, _LANES), lambda i: (i, 0))],
        out_specs=pl.BlockSpec((tile_rows, _LANES), lambda i: (i, 0)),
        compiler_params=pltpu.CompilerParams(
            # TODO(synk): on v7x, pltpu.CORE_PARALLEL (or pl.core_map over a
            # 2-TC mesh) would split the row axis across both TensorCores for
            # ~2x effective copy bandwidth; plain "parallel" is kept here for
            # portability across v5e/v6e/v7x.
            dimension_semantics=("parallel",),
            vmem_limit_bytes=64 << 20,
        ),
    )(x2d)

    out_flat = out2d.reshape(-1)
    if pad:
        out_flat = out_flat[:total]
    return out_flat.reshape(X.shape)


_pallas_identity_jit = jax.jit(_pallas_identity)


def decoder_forward(X, state=None, *, use_pallas_template=False):
    """Decoder.forward: abstract in the reference module (no compute defined).

    Default path: return (X, state) with no kernel launch -- an identity has a
    zero-byte roofline, so "no kernel" beats any tiling.  Set
    use_pallas_template=True to exercise the Pallas pass-through skeleton.
    """
    if not use_pallas_template:
        return X, state
    return _pallas_identity_jit(X), state


def decoder_init_state(enc_outputs, enc_valid_lens, *args):
    # Abstract in the reference module; package encoder outputs as the state
    # tuple (minimal, non-fabricated interpretation).
    # TODO(synk): concrete subclasses define their own state structure.
    return (enc_outputs, enc_valid_lens)


if __name__ == "__main__":
    key = jax.random.PRNGKey(0)
    B, T, D = 2, 8, 32  # small [batch, seq, hidden]
    X = jax.random.normal(key, (B, T, D), dtype=jnp.float32)

    # Encoder-side inputs only feed init_state (no compute in the base class).
    k_enc, _ = jax.random.split(key)
    enc_outputs = jax.random.normal(k_enc, (B, T, D), dtype=jnp.float32)
    enc_valid_lens = jnp.array([T, T], dtype=jnp.int32)

    state = decoder_init_state(enc_outputs, enc_valid_lens)

    # Default (optimized) path: no kernel at all.
    out_fast, new_state = decoder_forward(X, state)
    assert out_fast.shape == X.shape
    assert jnp.allclose(out_fast, X)

    # Pallas template path: run once to verify the kernel compiles and is an
    # exact pass-through.
    out_pallas, _ = decoder_forward(X, state, use_pallas_template=True)
    out_pallas = jax.block_until_ready(out_pallas)
    assert out_pallas.shape == X.shape
    assert jnp.allclose(out_pallas, X)

    print("KERNEL_OK")
</pallas_src>

<mosaic_0001>
module attributes {stable_mosaic.version = 11 : i64} {
  func.func @_decoder_identity_kernel(%arg0: i32, %arg1: memref<8x128xf32, #tpu.memory_space<vmem>>, %arg2: memref<8x128xf32, #tpu.memory_space<vmem>>) attributes {dimension_semantics = [#tpu.dimension_semantics<parallel>], iteration_bounds = array<i64: 1>, scalar_prefetch = 0 : i64, scratch_operands = 0 : i64, tpu.core_type = #tpu.core_type<tc>, window_params = [{transform_indices = @transform_0, window_bounds = array<i64: 8, 128>}, {transform_indices = @transform_1, window_bounds = array<i64: 8, 128>}]} {
    %c0 = arith.constant 0 : index
    %c0_0 = arith.constant 0 : index
    %0 = vector.load %arg1[%c0, %c0_0] : memref<8x128xf32, #tpu.memory_space<vmem>>, vector<8x128xf32>
    %c0_1 = arith.constant 0 : index
    %c0_2 = arith.constant 0 : index
    %1 = vector.load %arg2[%c0_1, %c0_2] : memref<8x128xf32, #tpu.memory_space<vmem>>, vector<8x128xf32>
    tpu.vector_store %arg2[%c0_1, %c0_2], %0 {strides = array<i32>} : memref<8x128xf32, #tpu.memory_space<vmem>>, vector<8x128xf32>,
    return
  }
  func.func @transform_0(%arg0: i32) -> (i32, i32) {
    %c0_i32 = arith.constant 0 : i32
    %c0_i32_0 = arith.constant 0 : i32
    return %arg0, %c0_i32 : i32, i32
  }
  func.func @transform_1(%arg0: i32) -> (i32, i32) {
    %c0_i32 = arith.constant 0 : i32
    %c0_i32_0 = arith.constant 0 : i32
    return %arg0, %c0_i32 : i32, i32
  }
}

</mosaic_0001>

<bundles_post_ra>
// kernel: _pallas_identity.1
= control target key start
LH: loop header
LB: loop body
LE: loop exit
PB: predicated region body
PF: predicated region fallthrough
CT: control target
= control target key end

     0   :  { %s30_s0 = inlined_call_operand.vmem [shape: f32[8,128], index: 0, kind: input, shape index: {}]   ;;  %s31_s1 = inlined_call_operand.vmem [shape: f32[8,128], index: 1, kind: output, shape index: {}]  }
   0x1   :  { %v8_v0 = vld [vmem:[%s30_s0] sm:$0xff] }
   0x2   :  { %9 = vst [vmem:[%s31_s1] sm:$0xff] %v8_v0 }

</bundles_post_ra>
